<compile_context>
chip_gen: v7x
topology: tpu7x:2x2x1
jax: 0.10.0
libtpu: 0.0.40
codegen_flags: <defaults>
</compile_context>

<pallas_src>
import functools
from typing import List, Tuple

import jax
import jax.numpy as jnp
from jax.experimental import pallas as pl
from jax.experimental.pallas import tpu as pltpu

LANE = 128
SUBLANE = 8


def _round_up(x: int, m: int) -> int:
    return ((x + m - 1) // m) * m


def _fused_mlp_kernel(*refs, num_layers: int):
    """Fused Linear(+ReLU) stack on one VMEM-resident batch tile.

    refs = (x_ref, w1_ref, b1_ref, ..., wN_ref, bN_ref, o_ref)
    Weights are stored transposed ([in_f, out_f]) so y = x @ W_t + b.
    """
    x_ref = refs[0]
    o_ref = refs[-1]
    wb = refs[1:-1]

    y = x_ref[...]
    for i in range(num_layers):
        w = wb[2 * i][...]
        b = wb[2 * i + 1][...]           # (1, out_f) -> broadcasts over rows
        y = jnp.dot(y, w, preferred_element_type=jnp.float32) + b
        if i < num_layers - 1:           # blocks[:-1] drops the trailing ReLU
            y = jnp.maximum(y, 0.0)
    o_ref[...] = y.astype(o_ref.dtype)


def fused_mlp(x: jax.Array,
              params: List[Tuple[jax.Array, jax.Array]],
              *, tile_b: int = 128) -> jax.Array:
    """x: [B, in_f]; params: list of (w_t [in_f, out_f], b [out_f]) -> [B, out_last]."""
    B, in_f = x.shape
    num_layers = len(params)
    out_f = params[-1][0].shape[1]

    # --- lane-dense layers: pad every layer's out dim to a multiple of 128 ---
    padded = []
    for (w_t, b) in params:
        of = w_t.shape[1]
        of_p = _round_up(of, LANE)
        if of_p != of:
            w_t = jnp.pad(w_t, ((0, 0), (0, of_p - of)))
            b = jnp.pad(b, ((0, of_p - of),))
        padded.append((w_t, b.reshape(1, -1)))

    # ... and pad the *input* dim of each subsequent layer to match the padded
    # output dim of the previous one (extra rows are zero -> math unchanged).
    fixed = [padded[0]]
    for li in range(1, num_layers):
        w_t, b = padded[li]
        prev_out_p = fixed[li - 1][0].shape[1]
        if w_t.shape[0] != prev_out_p:
            w_t = jnp.pad(w_t, ((0, prev_out_p - w_t.shape[0]), (0, 0)))
        fixed.append((w_t, b))
    out_pad = fixed[-1][0].shape[1]

    # --- batch tiling: tile must be a multiple of 8 (sublane) ---
    tile_b = max(SUBLANE, min(tile_b, _round_up(B, SUBLANE)))
    B_pad = _round_up(B, tile_b)
    if B_pad != B:
        x = jnp.pad(x, ((0, B_pad - B), (0, 0)))
    grid = (B_pad // tile_b,)

    # --- flatten inputs: x tile streams, weights/biases stay VMEM-resident ---
    inputs = [x]
    in_specs = [pl.BlockSpec((tile_b, in_f), lambda i: (i, 0))]
    for (w_t, b2) in fixed:
        inputs += [w_t, b2]
        in_specs += [
            pl.BlockSpec(w_t.shape, lambda i: (0, 0)),   # resident across grid
            pl.BlockSpec(b2.shape, lambda i: (0, 0)),
        ]

    kernel = functools.partial(_fused_mlp_kernel, num_layers=num_layers)
    y_pad = pl.pallas_call(
        kernel,
        out_shape=jax.ShapeDtypeStruct((B_pad, out_pad), x.dtype),
        grid=grid,
        in_specs=in_specs,
        out_specs=pl.BlockSpec((tile_b, out_pad), lambda i: (i, 0)),
        compiler_params=pltpu.CompilerParams(
            dimension_semantics=("parallel",)),   # shard across v7x's 2 TCs
    )(*inputs)

    return y_pad[:B, :out_f]


def init_mlp_params(key, in_features: int, layers: List[int]
                    ) -> List[Tuple[jax.Array, jax.Array]]:
    """Deterministic init matching PyTorch nn.Linear shapes.

    Returns list of (w_t, b) with w_t shape [in_f, out_f], b shape [out_f].
    """
    params = []
    in_f = in_features
    for f in layers:
        key, kw, kb = jax.random.split(key, 3)
        bound = 1.0 / (in_f ** 0.5)
        # PyTorch Linear weight is (out_f, in_f); we keep it transposed.
        w = jax.random.uniform(kw, (f, in_f), jnp.float32, -bound, bound)
        b = jax.random.uniform(kb, (f,), jnp.float32, -bound, bound)
        params.append((w.T, b))
        in_f = f
    return params


def mlp_forward(x: jax.Array, params: List[Tuple[jax.Array, jax.Array]]):
    """Reproduces MLP.forward: fused Linear/ReLU stack (no trailing ReLU), squeeze."""
    y = fused_mlp(x, params)
    return {"out": jnp.squeeze(y)}


if __name__ == "__main__":
    key = jax.random.PRNGKey(0)
    key, kx = jax.random.split(key)

    in_features = 16
    layers = [32, 16, 1]          # opt['layers']
    batch = 256                   # 2 batch tiles of 128 -> exercises the grid

    x = jax.random.normal(kx, (batch, in_features), jnp.float32)
    params = init_mlp_params(key, in_features, layers)

    fwd = jax.jit(mlp_forward)
    out = fwd(x, params)
    jax.block_until_ready(out["out"])

    # sanity check against plain-JAX reference (unpadded params)
    y_ref = x
    for i, (w_t, b) in enumerate(params):
        y_ref = y_ref @ w_t + b
        if i < len(params) - 1:
            y_ref = jnp.maximum(y_ref, 0.0)
    y_ref = jnp.squeeze(y_ref)
    assert out["out"].shape == y_ref.shape, (out["out"].shape, y_ref.shape)
    assert jnp.allclose(out["out"], y_ref, atol=1e-5, rtol=1e-5)

    print("KERNEL_OK")
</pallas_src>

<mosaic_0001>
module attributes {stable_mosaic.version = 11 : i64} {
  func.func @_fused_mlp_kernel(%arg0: i32, %arg1: memref<128x16xf32, #tpu.memory_space<vmem>>, %arg2: memref<16x128xf32, #tpu.memory_space<vmem>>, %arg3: memref<1x128xf32, #tpu.memory_space<vmem>>, %arg4: memref<128x128xf32, #tpu.memory_space<vmem>>, %arg5: memref<1x128xf32, #tpu.memory_space<vmem>>, %arg6: memref<128x128xf32, #tpu.memory_space<vmem>>, %arg7: memref<1x128xf32, #tpu.memory_space<vmem>>, %arg8: memref<128x128xf32, #tpu.memory_space<vmem>>) attributes {dimension_semantics = [#tpu.dimension_semantics<parallel>], iteration_bounds = array<i64: 2>, scalar_prefetch = 0 : i64, scratch_operands = 0 : i64, tpu.core_type = #tpu.core_type<tc>, window_params = [{transform_indices = @transform_0, window_bounds = array<i64: 128, 16>}, {pipeline_mode = #tpu.pipeline_mode<synchronous>, transform_indices = @transform_1, window_bounds = array<i64: 16, 128>}, {pipeline_mode = #tpu.pipeline_mode<synchronous>, transform_indices = @transform_2, window_bounds = array<i64: 1, 128>}, {pipeline_mode = #tpu.pipeline_mode<synchronous>, transform_indices = @transform_3, window_bounds = array<i64: 128, 128>}, {pipeline_mode = #tpu.pipeline_mode<synchronous>, transform_indices = @transform_4, window_bounds = array<i64: 1, 128>}, {pipeline_mode = #tpu.pipeline_mode<synchronous>, transform_indices = @transform_5, window_bounds = array<i64: 128, 128>}, {pipeline_mode = #tpu.pipeline_mode<synchronous>, transform_indices = @transform_6, window_bounds = array<i64: 1, 128>}, {transform_indices = @transform_7, window_bounds = array<i64: 128, 128>}]} {
    %c0 = arith.constant 0 : index
    %c0_0 = arith.constant 0 : index
    %0 = vector.load %arg1[%c0, %c0_0] : memref<128x16xf32, #tpu.memory_space<vmem>>, vector<128x16xf32>
    %c0_1 = arith.constant 0 : index
    %c0_2 = arith.constant 0 : index
    %1 = vector.load %arg2[%c0_1, %c0_2] : memref<16x128xf32, #tpu.memory_space<vmem>>, vector<16x128xf32>
    %c0_3 = arith.constant 0 : index
    %c0_4 = arith.constant 0 : index
    %2 = vector.load %arg3[%c0_3, %c0_4] : memref<1x128xf32, #tpu.memory_space<vmem>>, vector<1x128xf32>
    %cst = arith.constant dense<0.000000e+00> : vector<128x128xf32>
    %3 = tpu.matmul %0, %1, %cst {dimension_numbers = #tpu.dot_dimension_numbers<[1], [0], [0], [1], [0, 0, 1, 1], [], []>} : vector<128x16xf32>, vector<16x128xf32>, vector<128x128xf32> -> vector<128x128xf32>
    %4 = vector.broadcast %2 : vector<1x128xf32> to vector<128x128xf32>
    %5 = arith.addf %3, %4 : vector<128x128xf32>
    %cst_5 = arith.constant 0.000000e+00 : f32
    %6 = vector.broadcast %cst_5 : f32 to vector<128x128xf32>
    %7 = arith.maximumf %5, %6 : vector<128x128xf32>
    %c0_6 = arith.constant 0 : index
    %c0_7 = arith.constant 0 : index
    %8 = vector.load %arg4[%c0_6, %c0_7] : memref<128x128xf32, #tpu.memory_space<vmem>>, vector<128x128xf32>
    %c0_8 = arith.constant 0 : index
    %c0_9 = arith.constant 0 : index
    %9 = vector.load %arg5[%c0_8, %c0_9] : memref<1x128xf32, #tpu.memory_space<vmem>>, vector<1x128xf32>
    %cst_10 = arith.constant dense<0.000000e+00> : vector<128x128xf32>
    %10 = tpu.matmul %7, %8, %cst_10 {dimension_numbers = #tpu.dot_dimension_numbers<[1], [0], [0], [1], [0, 0, 1, 1], [], []>} : vector<128x128xf32>, vector<128x128xf32>, vector<128x128xf32> -> vector<128x128xf32>
    %11 = vector.broadcast %9 : vector<1x128xf32> to vector<128x128xf32>
    %12 = arith.addf %10, %11 : vector<128x128xf32>
    %cst_11 = arith.constant 0.000000e+00 : f32
    %13 = vector.broadcast %cst_11 : f32 to vector<128x128xf32>
    %14 = arith.maximumf %12, %13 : vector<128x128xf32>
    %c0_12 = arith.constant 0 : index
    %c0_13 = arith.constant 0 : index
    %15 = vector.load %arg6[%c0_12, %c0_13] : memref<128x128xf32, #tpu.memory_space<vmem>>, vector<128x128xf32>
    %c0_14 = arith.constant 0 : index
    %c0_15 = arith.constant 0 : index
    %16 = vector.load %arg7[%c0_14, %c0_15] : memref<1x128xf32, #tpu.memory_space<vmem>>, vector<1x128xf32>
    %cst_16 = arith.constant dense<0.000000e+00> : vector<128x128xf32>
    %17 = tpu.matmul %14, %15, %cst_16 {dimension_numbers = #tpu.dot_dimension_numbers<[1], [0], [0], [1], [0, 0, 1, 1], [], []>} : vector<128x128xf32>, vector<128x128xf32>, vector<128x128xf32> -> vector<128x128xf32>
    %18 = vector.broadcast %16 : vector<1x128xf32> to vector<128x128xf32>
    %19 = arith.addf %17, %18 : vector<128x128xf32>
    %c0_17 = arith.constant 0 : index
    %c0_18 = arith.constant 0 : index
    %20 = vector.load %arg8[%c0_17, %c0_18] : memref<128x128xf32, #tpu.memory_space<vmem>>, vector<128x128xf32>
    tpu.vector_store %arg8[%c0_17, %c0_18], %19 {strides = array<i32>} : memref<128x128xf32, #tpu.memory_space<vmem>>, vector<128x128xf32>,
    return
  }
  func.func @transform_0(%arg0: i32) -> (i32, i32) {
    %c0_i32 = arith.constant 0 : i32
    %c0_i32_0 = arith.constant 0 : i32
    return %arg0, %c0_i32 : i32, i32
  }
  func.func @transform_1(%arg0: i32) -> (i32, i32) {
    %c0_i32 = arith.constant 0 : i32
    %c0_i32_0 = arith.constant 0 : i32
    %c0_i32_1 = arith.constant 0 : i32
    return %c0_i32, %c0_i32_0 : i32, i32
  }
  func.func @transform_2(%arg0: i32) -> (i32, i32) {
    %c0_i32 = arith.constant 0 : i32
    %c0_i32_0 = arith.constant 0 : i32
    %c0_i32_1 = arith.constant 0 : i32
    return %c0_i32, %c0_i32_0 : i32, i32
  }
  func.func @transform_3(%arg0: i32) -> (i32, i32) {
    %c0_i32 = arith.constant 0 : i32
    %c0_i32_0 = arith.constant 0 : i32
    %c0_i32_1 = arith.constant 0 : i32
    return %c0_i32, %c0_i32_0 : i32, i32
  }
  func.func @transform_4(%arg0: i32) -> (i32, i32) {
    %c0_i32 = arith.constant 0 : i32
    %c0_i32_0 = arith.constant 0 : i32
    %c0_i32_1 = arith.constant 0 : i32
    return %c0_i32, %c0_i32_0 : i32, i32
  }
  func.func @transform_5(%arg0: i32) -> (i32, i32) {
    %c0_i32 = arith.constant 0 : i32
    %c0_i32_0 = arith.constant 0 : i32
    %c0_i32_1 = arith.constant 0 : i32
    return %c0_i32, %c0_i32_0 : i32, i32
  }
  func.func @transform_6(%arg0: i32) -> (i32, i32) {
    %c0_i32 = arith.constant 0 : i32
    %c0_i32_0 = arith.constant 0 : i32
    %c0_i32_1 = arith.constant 0 : i32
    return %c0_i32, %c0_i32_0 : i32, i32
  }
  func.func @transform_7(%arg0: i32) -> (i32, i32) {
    %c0_i32 = arith.constant 0 : i32
    %c0_i32_0 = arith.constant 0 : i32
    return %arg0, %c0_i32 : i32, i32
  }
}

</mosaic_0001>

<bundles_post_ra>
// kernel: mlp_forward.1
= control target key start
LH: loop header
LB: loop body
LE: loop exit
PB: predicated region body
PF: predicated region fallthrough
CT: control target
= control target key end

     0   :  { %s1317_s24 = smov 0   ;;  %s1504_s0 = inlined_call_operand.vmem [shape: f32[256,16], index: 0, kind: input, shape index: {}]   ;;  %s1505_s1 = inlined_call_operand.vmem [shape: f32[16,128], index: 1, kind: input, shape index: {}]   ;;  %s1506_s2 = inlined_call_operand.vmem [shape: f32[1,128], index: 2, kind: input, shape index: {}]   ;;  %s1507_s3 = inlined_call_operand.vmem [shape: f32[128,128], index: 3, kind: input, shape index: {}]   ;;  %s1508_s4 = inlined_call_operand.vmem [shape: f32[1,128], index: 4, kind: input, shape index: {}]   ;;  %s1509_s5 = inlined_call_operand.vmem [shape: f32[128,128], index: 5, kind: input, shape index: {}]   ;;  %s1510_s6 = inlined_call_operand.vmem [shape: f32[1,128], index: 6, kind: input, shape index: {}]   ;;  %s1511_s7 = inlined_call_operand.vmem [shape: f32[256,128], index: 7, kind: output, shape index: {}]  }
   0x1 LB: > { %s941_s25 = sadd.s32 4294967295, %s1275_s24   ;;  %p945_p0 = scmp.ge.s32.totalorder %s1275_s24, 1  ;;  %s1275_s24 = sphi %s1317_s24, %s17_s24  }
   0x2   : > { %p238_p1 = scmp.lt.s32.totalorder %s1275_s24, 3 }
   0x4   : > { %p239_p2 = pnand %p945_p0, %p238_p1 }
   0x5   : > { %v298_v0 = vld [vmem:[%s1505_s1] sm:$0xff] (!%p239_p2)  ;;  %v299_v1 = vld [vmem:[%s1505_s1 + $0x8] sm:$0xff] (!%p239_p2)  ;;  %s946_s30 = sshll.u32 (!%p239_p2), %s941_s25, 4  ;;  %v519_v5 = vld [vmem:[%s1507_s3 + $0x10] sm:$0xff] (!%p239_p2)  ;;  %vm307_vm0 = vcmask (!%p239_p2), 130048  }
   0x6   : > { %242 = sbr.rel (%p239_p2) target bundleno = 698 (0x2ba), region = 48  ;;  %v517_v2 = vld [vmem:[%s1507_s3] sm:$0xff] (!%p239_p2)  ;;  %v1193_v3 = vpack.c.bf16 (!%p239_p2), %v299_v1, %v298_v0  ;;  %p271_p3 = scmp.lt.s32.totalorder (!%p239_p2), %s946_s30, 31  ;;  %v518_v4 = vld [vmem:[%s1507_s3 + $0x8] sm:$0xff] (!%p239_p2)  ;;  %v520_v6 = vld [vmem:[%s1507_s3 + $0x18] sm:$0xff] (!%p239_p2) }
   0x7   : > { %v1197_v7 = vpack.c.bf16 (!%p239_p2), %v518_v4, %v517_v2  ;;  %v1201_v8 = vpack.c.bf16 (!%p239_p2), %v520_v6, %v519_v5  ;;  %v521_v9 = vld [vmem:[%s1507_s3 + $0x20] sm:$0xff] (!%p239_p2)  ;;  %v522_v10 = vld [vmem:[%s1507_s3 + $0x28] sm:$0xff] (!%p239_p2)  ;;  %v523_v12 = vld [vmem:[%s1507_s3 + $0x30] sm:$0xff] (!%p239_p2) }
   0x8   : > { %1194 = vmatprep.subr.bf16.mxu0 (!%p239_p2), %v1193_v3  ;;  %v1205_v11 = vpack.c.bf16 (!%p239_p2), %v522_v10, %v521_v9  ;;  %v524_v13 = vld [vmem:[%s1507_s3 + $0x38] sm:$0xff] (!%p239_p2)  ;;  %v525_v20 = vld [vmem:[%s1507_s3 + $0x40] sm:$0xff] (!%p239_p2)  ;;  %v526_v21 = vld [vmem:[%s1507_s3 + $0x48] sm:$0xff] (!%p239_p2) }
   0x9   : > { %1196 = vmatpush3.bf16.msra.mxu0 (!%p239_p2), %v1193_v3  ;;  %1198 = vmatprep.subr.bf16.mxu1 (!%p239_p2), %v1197_v7  ;;  %v1209_v18 = vpack.c.bf16 (!%p239_p2), %v524_v13, %v523_v12  ;;  %v1213_v23 = vpack.c.bf16 (!%p239_p2), %v526_v21, %v525_v20  ;;  %v527_v25 = vld [vmem:[%s1507_s3 + $0x50] sm:$0xff] (!%p239_p2)  ;;  %v528_v26 = vld [vmem:[%s1507_s3 + $0x58] sm:$0xff] (!%p239_p2)  ;;  %v529_v30 = vld [vmem:[%s1507_s3 + $0x60] sm:$0xff] (!%p239_p2) }
   0xa   : > { %1200 = vmatpush3.bf16.msra.mxu1 (!%p239_p2), %v1197_v7  ;;  %v1217_v28 = vpack.c.bf16 (!%p239_p2), %v528_v26, %v527_v25  ;;  %v530_v31 = vld [vmem:[%s1507_s3 + $0x68] sm:$0xff] (!%p239_p2)  ;;  %v531_v40 = vld [vmem:[%s1507_s3 + $0x70] sm:$0xff] (!%p239_p2)  ;;  %v532_v41 = vld [vmem:[%s1507_s3 + $0x78] sm:$0xff] (!%p239_p2) }
   0xb   : > { %1202 = vmatprep.subr.bf16.mxu1 (!%p239_p2), %v1201_v8  ;;  %v1221_v33 = vpack.c.bf16 (!%p239_p2), %v530_v31, %v529_v30  ;;  %v1225_v42 = vpack.c.bf16 (!%p239_p2), %v532_v41, %v531_v40  ;;  %v701_v43 = vld [vmem:[%s1509_s5] sm:$0xff] (!%p239_p2)  ;;  %v702_v44 = vld [vmem:[%s1509_s5 + $0x8] sm:$0xff] (!%p239_p2)  ;;  %v703_v45 = vld [vmem:[%s1509_s5 + $0x10] sm:$0xff] (!%p239_p2) }
   0xc   : > { %v1229_v46 = vpack.c.bf16 (!%p239_p2), %v702_v44, %v701_v43  ;;  %v704_v47 = vld [vmem:[%s1509_s5 + $0x18] sm:$0xff] (!%p239_p2)  ;;  %v705_v49 = vld [vmem:[%s1509_s5 + $0x20] sm:$0xff] (!%p239_p2)  ;;  %v706_v50 = vld [vmem:[%s1509_s5 + $0x28] sm:$0xff] (!%p239_p2) }
   0xd   : > { %s1513_s30 = smov (!%p271_p3, %s946_s30), 31  ;;  %v1233_v48 = vpack.c.bf16 %v704_v47, %v703_v45  ;;  %v1237_v51 = vpack.c.bf16 %v706_v50, %v705_v49  ;;  %v707_v52 = vld [vmem:[%s1509_s5 + $0x30] sm:$0xff]  ;;  %v708_v53 = vld [vmem:[%s1509_s5 + $0x38] sm:$0xff]  ;;  %v709_v55 = vld [vmem:[%s1509_s5 + $0x40] sm:$0xff] }
   0xe   : > { %s947_s20 = sshll.u32 %s1513_s30, 3  ;;  %1204 = vmatpush3.bf16.msra.mxu1 %v1201_v8  ;;  %1230 = vmatprep.subr.bf16.mxu0 %v1229_v46  ;;  %v1241_v54 = vpack.c.bf16 %v708_v53, %v707_v52  ;;  %v710_v56 = vld [vmem:[%s1509_s5 + $0x48] sm:$0xff]  ;;  %v711_v58 = vld [vmem:[%s1509_s5 + $0x50] sm:$0xff]  ;;  %v712_v59 = vld [vmem:[%s1509_s5 + $0x58] sm:$0xff] }
   0xf   : > { %s1357_s23 = scalar_lea.vmem %s1504_s0, %s947_s20  ;;  %1206 = vmatprep.subr.bf16.mxu1 %v1205_v11  ;;  %v1245_v57 = vpack.c.bf16 %v710_v56, %v709_v55  ;;  %v1249_v60 = vpack.c.bf16 %v712_v59, %v711_v58  ;;  %v713_v61 = vld [vmem:[%s1509_s5 + $0x60] sm:$0xff]  ;;  %v714_v62 = vld [vmem:[%s1509_s5 + $0x68] sm:$0xff]  ;;  %v715_v49 = vld [vmem:[%s1509_s5 + $0x70] sm:$0xff]  ;;  %s1483_s26 = scalar_lea.vmem %s1511_s7, %s947_s20 }
  0x10   : > { %v282_v14 = vld [vmem:[%s1357_s23] sm:$0xff]  ;;  %v283_v15 = vld [vmem:[%s1357_s23 + $0x8] sm:$0xff]  ;;  %v284_v16 = vld [vmem:[%s1357_s23 + $0x10] sm:$0xff]  ;;  %v1253_v63 = vpack.c.bf16 %v714_v62, %v713_v61 }
  0x11   : > { %1057 = vmatprep.mubr.msk.f32.mxu0 %vm307_vm0, %v282_v14  ;;  %v285_v17 = vld [vmem:[%s1357_s23 + $0x18] sm:$0xff]  ;;  %v286_v19 = vld [vmem:[%s1357_s23 + $0x20] sm:$0xff]  ;;  %v287_v22 = vld [vmem:[%s1357_s23 + $0x28] sm:$0xff] }
  0x12   : > { %1058 = vmatmul.mubr.msk.f32.vlgmr.msra.gmra.mrb[0].mxu0 %vm307_vm0, %v283_v15  ;;  %1208 = vmatpush3.bf16.msra.mxu1 %v1205_v11  ;;  %v288_v24 = vld [vmem:[%s1357_s23 + $0x30] sm:$0xff]  ;;  %v289_v27 = vld [vmem:[%s1357_s23 + $0x38] sm:$0xff]  ;;  %v290_v29 = vld [vmem:[%s1357_s23 + $0x40] sm:$0xff] }
  0x13   : > { %1060 = vmatprep.mubr.msk.f32.mxu0 %vm307_vm0, %v284_v16  ;;  %1210 = vmatprep.subr.bf16.mxu1 %v1209_v18  ;;  %v291_v32 = vld [vmem:[%s1357_s23 + $0x48] sm:$0xff]  ;;  %v292_v34 = vld [vmem:[%s1357_s23 + $0x50] sm:$0xff]  ;;  %v293_v35 = vld [vmem:[%s1357_s23 + $0x58] sm:$0xff] }
  0x14   : > { %v294_v36 = vld [vmem:[%s1357_s23 + $0x60] sm:$0xff]  ;;  %v295_v37 = vld [vmem:[%s1357_s23 + $0x68] sm:$0xff]  ;;  %v296_v38 = vld [vmem:[%s1357_s23 + $0x70] sm:$0xff]  ;;  %1232 = vmatpush3.bf16.msra.mxu0 %v1229_v46 }
  0x15   : > { %v297_v39 = vld [vmem:[%s1357_s23 + $0x78] sm:$0xff]  ;;  %1234 = vmatprep.subr.bf16.mxu0 %v1233_v48  ;;  %v950_v0 = vld [vmem:[%s1506_s2] ss:$0 sm:$0xff] }
  0x16   : > { %1061 = vmatmul.mubr.msk.f32.gmra.mrb[2].mxu0 %vm307_vm0, %v285_v17  ;;  %1212 = vmatpush3.bf16.msra.mxu1 %v1209_v18  ;;  %v716_v50 = vld [vmem:[%s1509_s5 + $0x78] sm:$0xff]  ;;  %v967_v52 = vld [vmem:[%s1508_s4] ss:$0 sm:$0xff] }
  0x17   : > { %1063 = vmatprep.mubr.msk.f32.mxu0 %vm307_vm0, %v286_v19  ;;  %1214 = vmatprep.subr.bf16.mxu1 %v1213_v23 }
  0x18   : > { %1236 = vmatpush3.bf16.msra.mxu0 %v1233_v48 }
  0x19   : > { %1238 = vmatprep.subr.bf16.mxu0 %v1237_v51 }
  0x1a   : > { %1064 = vmatmul.mubr.msk.f32.gmra.mrb[4].mxu0 %vm307_vm0, %v287_v22  ;;  %1216 = vmatpush3.bf16.msra.mxu1 %v1213_v23 }
  0x1b   : > { %1066 = vmatprep.mubr.msk.f32.mxu0 %vm307_vm0, %v288_v24  ;;  %1218 = vmatprep.subr.bf16.mxu1 %v1217_v28 }
  0x1c   : > { %1240 = vmatpush3.bf16.msra.mxu0 %v1237_v51  ;;  %v1257_v51 = vpack.c.bf16 %v716_v50, %v715_v49 }
  0x1d   : > { %1242 = vmatprep.subr.bf16.mxu0 %v1241_v54 }
  0x1e   : > { %1067 = vmatmul.mubr.msk.f32.gmra.mrb[6].mxu0 %vm307_vm0, %v289_v27  ;;  %1220 = vmatpush3.bf16.msra.mxu1 %v1217_v28 }
  0x1f   : > { %1069 = vmatprep.mubr.msk.f32.mxu0 %vm307_vm0, %v290_v29  ;;  %1222 = vmatprep.subr.bf16.mxu1 %v1221_v33 }
  0x20   : > { %1244 = vmatpush3.bf16.msra.mxu0 %v1241_v54 }
  0x21   : > { %1246 = vmatprep.subr.bf16.mxu0 %v1245_v57 }
  0x22   : > { %1070 = vmatmul.mubr.msk.f32.gmra.mrb[8].mxu0 %vm307_vm0, %v291_v32  ;;  %1224 = vmatpush3.bf16.msra.mxu1 %v1221_v33 }
  0x23   : > { %1072 = vmatprep.mubr.msk.f32.mxu0 %vm307_vm0, %v292_v34  ;;  %1226 = vmatprep.subr.bf16.mxu1 %v1225_v42 }
  0x24   : > { %1248 = vmatpush3.bf16.msra.mxu0 %v1245_v57 }
  0x25   : > { %1250 = vmatprep.subr.bf16.mxu0 %v1249_v60 }
  0x26   : > { %1073 = vmatmul.mubr.msk.f32.gmra.mrb[10].mxu0 %vm307_vm0, %v293_v35  ;;  %1228 = vmatpush3.bf16.msra.mxu1 %v1225_v42 }
  0x27   : > { %1075 = vmatprep.mubr.msk.f32.mxu0 %vm307_vm0, %v294_v36 }
  0x28   : > { %1252 = vmatpush3.bf16.msra.mxu0 %v1249_v60 }
  0x29   : > { %1254 = vmatprep.subr.bf16.mxu0 %v1253_v63 }
  0x2a   : > { %1076 = vmatmul.mubr.msk.f32.gmra.mrb[12].mxu0 %vm307_vm0, %v295_v37 }
  0x2b   : > { %1078 = vmatprep.mubr.msk.f32.mxu0 %vm307_vm0, %v296_v38 }
  0x2c   : > { %1256 = vmatpush3.bf16.msra.mxu0 %v1253_v63 }
  0x2d   : > { %1258 = vmatprep.subr.bf16.mxu0 %v1257_v51 }
  0x2e   : > { %1079 = vmatmul.mubr.msk.f32.gmra.mrb[14].mxu0 %vm307_vm0, %v297_v39 }
  0x30   : > { %1260 = vmatpush3.bf16.msra.mxu0 %v1257_v51 }
  0xe5   : > { %v1059_v1 = vpop.f32.mrb[0].mxu0 }
  0xe6   : > { %v428_v2 = vadd.f32 %v1059_v1, %v950_v0  ;;  %v422_v3 = vpop.f32.mrb[1].mxu0 }
  0xe7   : > { %v423_v4 = vadd.f32 %v950_v0, %v422_v3 }
  0xe8   : > { %v502_v7 = vmax.f32 %v428_v2, 0.0 }
  0xe9   : > { %v1062_v5 = vpop.f32.mrb[2].mxu0  ;;  %v501_v6 = vmax.f32 %v423_v4, 0.0 }
  0xea   : > { %v438_v8 = vadd.f32 %v1062_v5, %v950_v0  ;;  %v432_v9 = vpop.f32.mrb[3].mxu0 }
  0xeb   : > { %v433_v10 = vadd.f32 %v950_v0, %v432_v9  ;;  %1113 = vmatprep.mubr.f32.mxu1 %v501_v6 }
  0xec   : > { %1114 = vmatmul.mubr.f32.vlgmr.msra.gmra.mrb[0].mxu1 %v502_v7  ;;  %v504_v13 = vmax.f32 %v438_v8, 0.0 }
  0xed   : > { %v503_v11 = vmax.f32 %v433_v10, 0.0  ;;  %v1065_v12 = vpop.f32.mrb[4].mxu0 }
  0xee   : > { %v448_v14 = vadd.f32 %v1065_v12, %v950_v0  ;;  %v442_v15 = vpop.f32.mrb[5].mxu0 }
  0xef   : > { %v443_v16 = vadd.f32 %v950_v0, %v442_v15  ;;  %1116 = vmatprep.mubr.f32.mxu1 %v503_v11 }
  0xf0   : > { %1117 = vmatmul.mubr.f32.gmra.mrb[2].mxu1 %v504_v13  ;;  %v506_v19 = vmax.f32 %v448_v14, 0.0 }
  0xf1   : > { %v505_v17 = vmax.f32 %v443_v16, 0.0  ;;  %v1068_v18 = vpop.f32.mrb[6].mxu0 }
  0xf2   : > { %v458_v20 = vadd.f32 %v1068_v18, %v950_v0  ;;  %v452_v21 = vpop.f32.mrb[7].mxu0 }
  0xf3   : > { %v453_v22 = vadd.f32 %v950_v0, %v452_v21  ;;  %1119 = vmatprep.mubr.f32.mxu1 %v505_v17 }
  0xf4   : > { %1120 = vmatmul.mubr.f32.gmra.mrb[4].mxu1 %v506_v19  ;;  %v508_v25 = vmax.f32 %v458_v20, 0.0 }
  0xf5   : > { %v507_v23 = vmax.f32 %v453_v22, 0.0  ;;  %v1071_v24 = vpop.f32.mrb[8].mxu0 }
  0xf6   : > { %v468_v26 = vadd.f32 %v1071_v24, %v950_v0  ;;  %v462_v27 = vpop.f32.mrb[9].mxu0 }
  0xf7   : > { %v463_v28 = vadd.f32 %v950_v0, %v462_v27  ;;  %1122 = vmatprep.mubr.f32.mxu1 %v507_v23 }
  0xf8   : > { %1123 = vmatmul.mubr.f32.gmra.mrb[6].mxu1 %v508_v25  ;;  %v510_v31 = vmax.f32 %v468_v26, 0.0 }
  0xf9   : > { %v509_v29 = vmax.f32 %v463_v28, 0.0  ;;  %v1074_v30 = vpop.f32.mrb[10].mxu0 }
  0xfa   : > { %v478_v32 = vadd.f32 %v1074_v30, %v950_v0  ;;  %v472_v33 = vpop.f32.mrb[11].mxu0 }
  0xfb   : > { %v473_v34 = vadd.f32 %v950_v0, %v472_v33  ;;  %1125 = vmatprep.mubr.f32.mxu1 %v509_v29 }
  0xfc   : > { %1126 = vmatmul.mubr.f32.gmra.mrb[8].mxu1 %v510_v31  ;;  %v512_v37 = vmax.f32 %v478_v32, 0.0 }
  0xfd   : > { %v511_v35 = vmax.f32 %v473_v34, 0.0  ;;  %v1077_v36 = vpop.f32.mrb[12].mxu0 }
  0xfe   : > { %v488_v38 = vadd.f32 %v1077_v36, %v950_v0  ;;  %v482_v39 = vpop.f32.mrb[13].mxu0 }
  0xff   : > { %v483_v40 = vadd.f32 %v950_v0, %v482_v39  ;;  %1128 = vmatprep.mubr.f32.mxu1 %v511_v35 }
 0x100   : > { %1129 = vmatmul.mubr.f32.gmra.mrb[10].mxu1 %v512_v37  ;;  %v514_v43 = vmax.f32 %v488_v38, 0.0  ;;  %v968_v37 = vld [vmem:[%s1510_s6] ss:$0 sm:$0xff] }
 0x101   : > { %v513_v41 = vmax.f32 %v483_v40, 0.0  ;;  %v1080_v42 = vpop.f32.mrb[14].mxu0 }
 0x102   : > { %v498_v44 = vadd.f32 %v1080_v42, %v950_v0  ;;  %v492_v45 = vpop.f32.mrb[15].mxu0 }
 0x103   : > { %v493_v46 = vadd.f32 %v950_v0, %v492_v45  ;;  %1131 = vmatprep.mubr.f32.mxu1 %v513_v41 }
 0x104   : > { %1132 = vmatmul.mubr.f32.gmra.mrb[12].mxu1 %v514_v43  ;;  %v516_v48 = vmax.f32 %v498_v44, 0.0 }
 0x105   : > { %v515_v47 = vmax.f32 %v493_v46, 0.0 }
 0x107   : > { %1134 = vmatprep.mubr.f32.mxu1 %v515_v47 }
 0x108   : > { %1135 = vmatmul.mubr.f32.gmra.mrb[14].mxu1 %v516_v48 }
 0x1bf   : > { %v1115_v53 = vpop.f32.mrb[0].mxu1 }
 0x1c0   : > { %v612_v54 = vadd.f32 %v1115_v53, %v967_v52  ;;  %v606_v55 = vpop.f32.mrb[1].mxu1 }
 0x1c1   : > { %v607_v56 = vadd.f32 %v967_v52, %v606_v55 }
 0x1c2   : > { %v686_v59 = vmax.f32 %v612_v54, 0.0 }
 0x1c3   : > { %v685_v57 = vmax.f32 %v607_v56, 0.0  ;;  %v1118_v58 = vpop.f32.mrb[2].mxu1 }
 0x1c4   : > { %v622_v60 = vadd.f32 %v1118_v58, %v967_v52  ;;  %v616_v61 = vpop.f32.mrb[3].mxu1 }
 0x1c5   : > { %v617_v62 = vadd.f32 %v967_v52, %v616_v61  ;;  %1169 = vmatprep.mubr.f32.mxu0 %v685_v57 }
 0x1c6   : > { %1170 = vmatmul.mubr.f32.vlgmr.msra.gmra.mrb[16].mxu0 %v686_v59  ;;  %v688_v1 = vmax.f32 %v622_v60, 0.0 }
 0x1c7   : > { %v687_v63 = vmax.f32 %v617_v62, 0.0  ;;  %v1121_v0 = vpop.f32.mrb[4].mxu1 }
 0x1c8   : > { %v632_v2 = vadd.f32 %v1121_v0, %v967_v52  ;;  %v626_v3 = vpop.f32.mrb[5].mxu1 }
 0x1c9   : > { %v627_v4 = vadd.f32 %v967_v52, %v626_v3  ;;  %1172 = vmatprep.mubr.f32.mxu0 %v687_v63 }
 0x1ca   : > { %1173 = vmatmul.mubr.f32.gmra.mrb[18].mxu0 %v688_v1  ;;  %v690_v7 = vmax.f32 %v632_v2, 0.0 }
 0x1cb   : > { %v689_v5 = vmax.f32 %v627_v4, 0.0  ;;  %v1124_v6 = vpop.f32.mrb[6].mxu1 }
 0x1cc   : > { %v642_v8 = vadd.f32 %v1124_v6, %v967_v52  ;;  %v636_v9 = vpop.f32.mrb[7].mxu1 }
 0x1cd   : > { %v637_v10 = vadd.f32 %v967_v52, %v636_v9  ;;  %1175 = vmatprep.mubr.f32.mxu0 %v689_v5 }
 0x1ce   : > { %1176 = vmatmul.mubr.f32.gmra.mrb[20].mxu0 %v690_v7  ;;  %v692_v13 = vmax.f32 %v642_v8, 0.0 }
 0x1cf   : > { %v691_v11 = vmax.f32 %v637_v10, 0.0  ;;  %v1127_v12 = vpop.f32.mrb[8].mxu1 }
 0x1d0   : > { %v652_v14 = vadd.f32 %v1127_v12, %v967_v52  ;;  %v646_v15 = vpop.f32.mrb[9].mxu1 }
 0x1d1   : > { %v647_v16 = vadd.f32 %v967_v52, %v646_v15  ;;  %1178 = vmatprep.mubr.f32.mxu0 %v691_v11 }
 0x1d2   : > { %1179 = vmatmul.mubr.f32.gmra.mrb[22].mxu0 %v692_v13  ;;  %v694_v19 = vmax.f32 %v652_v14, 0.0 }
 0x1d3   : > { %v693_v17 = vmax.f32 %v647_v16, 0.0  ;;  %v1130_v18 = vpop.f32.mrb[10].mxu1 }
 0x1d4   : > { %v662_v20 = vadd.f32 %v1130_v18, %v967_v52  ;;  %v656_v21 = vpop.f32.mrb[11].mxu1 }
 0x1d5   : > { %v657_v22 = vadd.f32 %v967_v52, %v656_v21  ;;  %1181 = vmatprep.mubr.f32.mxu0 %v693_v17 }
 0x1d6   : > { %1182 = vmatmul.mubr.f32.gmra.mrb[24].mxu0 %v694_v19  ;;  %v696_v25 = vmax.f32 %v662_v20, 0.0 }
 0x1d7   : > { %v695_v23 = vmax.f32 %v657_v22, 0.0  ;;  %v1133_v24 = vpop.f32.mrb[12].mxu1 }
 0x1d8   : > { %v672_v26 = vadd.f32 %v1133_v24, %v967_v52  ;;  %v666_v27 = vpop.f32.mrb[13].mxu1 }
 0x1d9   : > { %v667_v28 = vadd.f32 %v967_v52, %v666_v27  ;;  %1184 = vmatprep.mubr.f32.mxu0 %v695_v23 }
 0x1da   : > { %1185 = vmatmul.mubr.f32.gmra.mrb[26].mxu0 %v696_v25  ;;  %v698_v31 = vmax.f32 %v672_v26, 0.0 }
 0x1db   : > { %v697_v29 = vmax.f32 %v667_v28, 0.0  ;;  %v1136_v30 = vpop.f32.mrb[14].mxu1 }
 0x1dc   : > { %v682_v32 = vadd.f32 %v1136_v30, %v967_v52  ;;  %v676_v33 = vpop.f32.mrb[15].mxu1 }
 0x1dd   : > { %v677_v34 = vadd.f32 %v967_v52, %v676_v33  ;;  %1187 = vmatprep.mubr.f32.mxu0 %v697_v29 }
 0x1de   : > { %1188 = vmatmul.mubr.f32.gmra.mrb[28].mxu0 %v698_v31  ;;  %v700_v36 = vmax.f32 %v682_v32, 0.0 }
 0x1df   : > { %v699_v35 = vmax.f32 %v677_v34, 0.0 }
 0x1e1   : > { %1190 = vmatprep.mubr.f32.mxu0 %v699_v35 }
 0x1e2   : > { %1191 = vmatmul.mubr.f32.gmra.mrb[30].mxu0 %v700_v36 }
 0x299   : > { %v1171_v38 = vpop.f32.mrb[16].mxu0 }
 0x29a   : > { %v796_v39 = vadd.f32 %v1171_v38, %v968_v37  ;;  %v790_v40 = vpop.f32.mrb[17].mxu0 }
 0x29b   : > { %v791_v41 = vadd.f32 %v968_v37, %v790_v40 }
 0x29c   : > { %870 = vst [vmem:[%s1483_s26 + $0x8] sm:$0xff] %v796_v39 }
 0x29d   : > { %869 = vst [vmem:[%s1483_s26] sm:$0xff] %v791_v41  ;;  %v1174_v42 = vpop.f32.mrb[18].mxu0 }
 0x29e   : > { %v806_v43 = vadd.f32 %v1174_v42, %v968_v37  ;;  %v800_v44 = vpop.f32.mrb[19].mxu0 }
 0x29f   : > { %v801_v45 = vadd.f32 %v968_v37, %v800_v44 }
 0x2a0   : > { %872 = vst [vmem:[%s1483_s26 + $0x18] sm:$0xff] %v806_v43 }
 0x2a1   : > { %871 = vst [vmem:[%s1483_s26 + $0x10] sm:$0xff] %v801_v45  ;;  %v1177_v46 = vpop.f32.mrb[20].mxu0 }
 0x2a2   : > { %v816_v47 = vadd.f32 %v1177_v46, %v968_v37  ;;  %v810_v48 = vpop.f32.mrb[21].mxu0 }
 0x2a3   : > { %v811_v49 = vadd.f32 %v968_v37, %v810_v48 }
 0x2a4   : > { %874 = vst [vmem:[%s1483_s26 + $0x28] sm:$0xff] %v816_v47 }
 0x2a5   : > { %873 = vst [vmem:[%s1483_s26 + $0x20] sm:$0xff] %v811_v49  ;;  %v1180_v50 = vpop.f32.mrb[22].mxu0 }
 0x2a6   : > { %v826_v51 = vadd.f32 %v1180_v50, %v968_v37  ;;  %v820_v52 = vpop.f32.mrb[23].mxu0 }
 0x2a7   : > { %v821_v53 = vadd.f32 %v968_v37, %v820_v52 }
 0x2a8   : > { %876 = vst [vmem:[%s1483_s26 + $0x38] sm:$0xff] %v826_v51 }
 0x2a9   : > { %875 = vst [vmem:[%s1483_s26 + $0x30] sm:$0xff] %v821_v53  ;;  %v1183_v54 = vpop.f32.mrb[24].mxu0 }
 0x2aa   : > { %v836_v55 = vadd.f32 %v1183_v54, %v968_v37  ;;  %v830_v56 = vpop.f32.mrb[25].mxu0 }
 0x2ab   : > { %v831_v57 = vadd.f32 %v968_v37, %v830_v56 }
 0x2ac   : > { %878 = vst [vmem:[%s1483_s26 + $0x48] sm:$0xff] %v836_v55 }
 0x2ad   : > { %877 = vst [vmem:[%s1483_s26 + $0x40] sm:$0xff] %v831_v57  ;;  %v1186_v58 = vpop.f32.mrb[26].mxu0 }
 0x2ae   : > { %v846_v59 = vadd.f32 %v1186_v58, %v968_v37  ;;  %v840_v60 = vpop.f32.mrb[27].mxu0 }
 0x2af   : > { %v841_v61 = vadd.f32 %v968_v37, %v840_v60 }
 0x2b0   : > { %880 = vst [vmem:[%s1483_s26 + $0x58] sm:$0xff] %v846_v59 }
 0x2b1   : > { %879 = vst [vmem:[%s1483_s26 + $0x50] sm:$0xff] %v841_v61  ;;  %v1189_v62 = vpop.f32.mrb[28].mxu0 }
 0x2b2   : > { %v856_v63 = vadd.f32 %v1189_v62, %v968_v37  ;;  %v850_v0 = vpop.f32.mrb[29].mxu0 }
 0x2b3   : > { %v851_v1 = vadd.f32 %v968_v37, %v850_v0 }
 0x2b4   : > { %882 = vst [vmem:[%s1483_s26 + $0x68] sm:$0xff] %v856_v63 }
 0x2b5   : > { %881 = vst [vmem:[%s1483_s26 + $0x60] sm:$0xff] %v851_v1  ;;  %v1192_v2 = vpop.f32.mrb[30].mxu0 }
 0x2b6   : > { %v866_v3 = vadd.f32 %v1192_v2, %v968_v37  ;;  %v860_v4 = vpop.f32.mrb[31].mxu0 }
 0x2b7   : > { %v861_v5 = vadd.f32 %v968_v37, %v860_v4 }
 0x2b8   : > { %884 = vst [vmem:[%s1483_s26 + $0x78] sm:$0xff] %v866_v3 }
 0x2b9   : > { %883 = vst [vmem:[%s1483_s26 + $0x70] sm:$0xff] %v861_v5 }
 0x2ba PF: > { %s17_s24 = sadd.s32 1, %s1275_s24  }
 0x2bb   : > { %p14_p4 = scmp.ge.s32.totalorder %s17_s24, 4  }
 0x2bd   :  { %16 = sbr.rel (!%p14_p4) target bundleno = 1 (0x1), region = 78 }

</bundles_post_ra>
